<compile_context>
chip_gen: v6e
topology: v6e:2x2x1
jax: 0.10.0
libtpu: 0.0.40
codegen_flags: <defaults>
</compile_context>

<pallas_src>
import math

import numpy as np
import jax
import jax.numpy as jnp
from jax.experimental import pallas as pl
from jax.experimental.pallas import tpu as pltpu


# --------------------------------------------------------------------------
# Buffer init — exact replica of the PyTorch __init__ math (host-side, once).
# --------------------------------------------------------------------------
def make_pos_enc(dim: int, h: int, w: int) -> np.ndarray:
    pos_enc = np.zeros((h, w, dim), dtype=np.float32)
    dim_h = dim // 2
    dim_w = dim // 2
    y_pos = np.repeat(np.arange(h)[:, None], w, axis=1).astype(np.float32)  # (h, w)
    x_pos = np.repeat(np.arange(w)[None, :], h, axis=0).astype(np.float32)  # (h, w)
    div_term_h = np.exp(
        np.arange(0, dim_h, 2).astype(np.float32) * -(math.log(10000.0) / dim_h)
    )
    div_term_w = np.exp(
        np.arange(0, dim_w, 2).astype(np.float32) * -(math.log(10000.0) / dim_w)
    )
    for i in range(0, dim_h, 2):
        if i < dim_h:
            pos_enc[:, :, i] = np.sin(y_pos * div_term_h[i // 2])
            pos_enc[:, :, i + 1] = np.cos(y_pos * div_term_h[i // 2])
    for i in range(0, dim_w, 2):
        if i + dim_h < dim:
            pos_enc[:, :, i + dim_h] = np.sin(x_pos * div_term_w[i // 2])
            pos_enc[:, :, i + dim_h + 1] = np.cos(x_pos * div_term_w[i // 2])
    pos_enc = pos_enc.reshape(h * w, dim)
    cls_pos_enc = np.zeros((1, dim), dtype=np.float32)
    pos_enc = np.concatenate([cls_pos_enc, pos_enc], axis=0)  # (h*w + 1, dim)
    return pos_enc[None, :, :]  # (1, h*w + 1, dim) — the registered buffer


def prepare_pos_enc(pos_enc_buffer: jax.Array, dtype) -> jax.Array:
    """One-time prep: drop cls row, flatten lane-dense, match activation dtype.

    (1, S+1, D) f32  ->  (1, S*D) in `dtype`.
    NOTE: for bf16 activations this rounds the PE term before the add (PyTorch
    keeps the buffer f32); exact for the f32 path.
    """
    _, sp1, d = pos_enc_buffer.shape
    s = sp1 - 1
    return pos_enc_buffer[0, 1:, :].reshape(1, s * d).astype(dtype)


# --------------------------------------------------------------------------
# Pallas kernel: lane-dense broadcast add.
#   x_ref : (b_tile, col_tile)   pe_ref : (1, col_tile)   o_ref : (b_tile, col_tile)
# --------------------------------------------------------------------------
def _add_pe_kernel(x_ref, pe_ref, o_ref):
    o_ref[...] = x_ref[...] + pe_ref[...]   # sublane broadcast of the PE row


# --------------------------------------------------------------------------
# Host-side tiling helpers
# --------------------------------------------------------------------------
def _round_up(a: int, b: int) -> int:
    return -(-a // b) * b


def _sublane_pack(itemsize: int) -> int:
    # f32 -> 8, bf16 -> 16, int8/fp8 -> 32 sublanes per vreg row group.
    return max(8, 32 // max(1, itemsize))


def _largest_divisor(total: int, unit: int, cap: int) -> int:
    """Largest divisor of `total` that is a multiple of `unit` and <= cap (0 if none)."""
    cap = min(cap, total)
    t = (cap // unit) * unit
    while t >= unit:
        if total % t == 0:
            return t
        t -= unit
    return 0


def _choose_tiles(B: int, SD_pad: int, itemsize: int, max_tile_bytes: int):
    """Pick (b_tile, col_tile). Budgets with sublane-padded rows."""
    pack = _sublane_pack(itemsize)
    rows_padded = _round_up(B, pack)            # real VMEM footprint of the rows

    # Path 1: full batch per block, widest column tile that fits the budget.
    col_cap = max(128, (max_tile_bytes // max(1, rows_padded * itemsize)) // 128 * 128)
    col_tile = _largest_divisor(SD_pad, 128, col_cap)
    # Minimum contiguous run per DMA'd row we want to keep (~4 KiB).
    min_col = min(SD_pad, _round_up(max(128, 4096 // itemsize), 128))
    if B <= pack or col_tile >= min_col:
        return B, (col_tile if col_tile else SD_pad)

    # Path 2: large batch squeezed the column tile too narrow -> tile batch too.
    col_tile = _largest_divisor(SD_pad, 128, max(min_col, 128))
    if col_tile == 0:
        col_tile = SD_pad
    row_cap = max(pack, (max_tile_bytes // max(1, col_tile * itemsize)) // pack * pack)
    b_tile = _largest_divisor(B, pack, row_cap)
    if b_tile == 0:
        b_tile = B   # no pack-multiple divisor of B; keep full batch per block
    return b_tile, col_tile


def _chip_budgets():
    """Per-generation (max_tile_bytes, vmem_limit_bytes, is_v7x)."""
    max_tile_bytes = 4 << 20          # ~4 MiB per block: >85% of HBM roofline,
    vmem_limit = 48 << 20             # trivially safe in 128 MiB VMEM (v5e/v6e)
    is_v7 = False
    try:
        kind = jax.devices()[0].device_kind.lower()
        is_v7 = "v7" in kind
    except Exception:
        pass
    try:
        info = pltpu.get_tpu_info()
        cap = getattr(info, "vmem_capacity_bytes", None)
        if cap is not None:
            vmem_limit = min(vmem_limit, int(cap * 0.7))   # headroom for compiler
    except Exception:
        pass
    if is_v7:
        vmem_limit = min(vmem_limit, 44 << 20)             # 64 MiB per-TC VMEM
    return max_tile_bytes, vmem_limit, is_v7


# --------------------------------------------------------------------------
# Forward: y = x + pe   (pe already prepared via prepare_pos_enc)
# --------------------------------------------------------------------------
def sincos2d_pe_forward(
    x: jax.Array,
    pe_flat: jax.Array,
    *,
    donate_x: bool = False,
    force_pallas: bool = False,
    max_tile_bytes: int | None = None,
) -> jax.Array:
    B, S, D = x.shape
    SD = S * D
    assert pe_flat.shape == (1, SD), (pe_flat.shape, (1, SD))
    pe_flat = pe_flat.astype(x.dtype)          # no-op if prepared with same dtype

    itemsize = x.dtype.itemsize
    tile_budget, vmem_limit, is_v7 = _chip_budgets()
    if max_tile_bytes is not None:
        tile_budget = max_tile_bytes

    # Tiny problems: a Pallas grid over a few MiB is pure launch/step overhead;
    # let XLA fuse the broadcast add instead.
    if (not force_pallas) and B * SD * itemsize < (2 << 20):
        return x + pe_flat.reshape(1, S, D)

    x2 = x.reshape(B, SD)                       # lane-dense 2-D view
    SD_pad = _round_up(SD, 128)
    if SD_pad != SD:
        # Keep bounded, pipelined, lane-dense tiles even for odd D: pad the
        # lane axis and slice the result (never a single whole-array block).
        x2 = jnp.pad(x2, ((0, 0), (0, SD_pad - SD)))
        pe2 = jnp.pad(pe_flat, ((0, 0), (0, SD_pad - SD)))
        donate_x = False                        # padded copy; nothing to alias
    else:
        pe2 = pe_flat

    b_tile, col_tile = _choose_tiles(B, SD_pad, itemsize, tile_budget)
    grid = (B // b_tile, SD_pad // col_tile)

    # Megacore / multi-TC sharding: on v7x mark the busiest axis CORE_PARALLEL
    # so both TensorCores stream data; plain "parallel" elsewhere.
    if is_v7:
        if grid[0] >= grid[1]:
            dim_sem = (pltpu.CORE_PARALLEL, pltpu.PARALLEL)
        else:
            dim_sem = (pltpu.PARALLEL, pltpu.CORE_PARALLEL)
    else:
        dim_sem = ("parallel", "parallel")

    def _run(sem):
        return pl.pallas_call(
            _add_pe_kernel,
            out_shape=jax.ShapeDtypeStruct((B, SD_pad), x.dtype),
            grid_spec=pltpu.PrefetchScalarGridSpec(
                num_scalar_prefetch=0,
                grid=grid,
                in_specs=[
                    pl.BlockSpec((b_tile, col_tile), lambda b, t: (b, t)),
                    pl.BlockSpec((1, col_tile), lambda b, t: (0, t)),
                ],
                out_specs=pl.BlockSpec((b_tile, col_tile), lambda b, t: (b, t)),
            ),
            compiler_params=pltpu.CompilerParams(
                dimension_semantics=sem,
                vmem_limit_bytes=vmem_limit,
            ),
            input_output_aliases=({0: 0} if donate_x else {}),
        )(x2, pe2)

    try:
        out2 = _run(dim_sem)
    except Exception:
        if dim_sem == ("parallel", "parallel"):
            raise
        # Portability fallback if CORE_PARALLEL is rejected on this chip.
        out2 = _run(("parallel", "parallel"))

    if SD_pad != SD:
        out2 = out2[:, :SD]
    return out2.reshape(B, S, D)


# --------------------------------------------------------------------------
# Demo / self-check
# --------------------------------------------------------------------------
if __name__ == "__main__":
    key = jax.random.PRNGKey(0)

    # --- Case 1: module defaults. h = w = 8 -> S = 64, dim = 32 (SD % 128 == 0).
    B, H, W, DIM = 2, 8, 8, 32
    S = H * W
    x = jax.random.normal(key, (B, S, DIM), dtype=jnp.float32)
    pos_enc_buffer = jnp.asarray(make_pos_enc(DIM, H, W))      # (1, S+1, D) f32
    pe_flat = prepare_pos_enc(pos_enc_buffer, x.dtype)         # (1, S*D), once
    ref = x + pos_enc_buffer[:, 1:, :]
    out = sincos2d_pe_forward(x, pe_flat, force_pallas=True)   # exercise kernel
    out = jax.block_until_ready(out)
    np.testing.assert_allclose(np.asarray(out), np.asarray(ref),
                               rtol=1e-6, atol=1e-6)

    # --- Case 2: non-128-divisible S*D exercises the pad-and-slice path.
    B2, H2, W2, DIM2 = 2, 3, 5, 32                             # S*D = 480
    S2 = H2 * W2
    x2 = jax.random.normal(jax.random.PRNGKey(1), (B2, S2, DIM2), dtype=jnp.float32)
    buf2 = jnp.asarray(make_pos_enc(DIM2, H2, W2))
    pe2 = prepare_pos_enc(buf2, x2.dtype)
    ref2 = x2 + buf2[:, 1:, :]
    out2 = sincos2d_pe_forward(x2, pe2, force_pallas=True)
    out2 = jax.block_until_ready(out2)
    np.testing.assert_allclose(np.asarray(out2), np.asarray(ref2),
                               rtol=1e-6, atol=1e-6)

    print("KERNEL_OK")
</pallas_src>

<mosaic_0001>
module attributes {stable_mosaic.version = 11 : i64} {
  func.func @_add_pe_kernel(%arg0: i32, %arg1: i32, %arg2: memref<2x2048xf32, #tpu.memory_space<vmem>>, %arg3: memref<1x2048xf32, #tpu.memory_space<vmem>>, %arg4: memref<2x2048xf32, #tpu.memory_space<vmem>>) attributes {dimension_semantics = [#tpu.dimension_semantics<parallel>, #tpu.dimension_semantics<parallel>], iteration_bounds = array<i64: 1, 1>, scalar_prefetch = 0 : i64, scratch_operands = 0 : i64, tpu.core_type = #tpu.core_type<tc>, window_params = [{transform_indices = @transform_0, window_bounds = array<i64: 2, 2048>}, {transform_indices = @transform_1, window_bounds = array<i64: 1, 2048>}, {transform_indices = @transform_2, window_bounds = array<i64: 2, 2048>}]} {
    %c0 = arith.constant 0 : index
    %c0_0 = arith.constant 0 : index
    %0 = vector.load %arg2[%c0, %c0_0] : memref<2x2048xf32, #tpu.memory_space<vmem>>, vector<2x2048xf32>
    %c0_1 = arith.constant 0 : index
    %c0_2 = arith.constant 0 : index
    %1 = vector.load %arg3[%c0_1, %c0_2] : memref<1x2048xf32, #tpu.memory_space<vmem>>, vector<1x2048xf32>
    %2 = vector.broadcast %1 : vector<1x2048xf32> to vector<2x2048xf32>
    %3 = arith.addf %0, %2 : vector<2x2048xf32>
    %c0_3 = arith.constant 0 : index
    %c0_4 = arith.constant 0 : index
    %4 = vector.load %arg4[%c0_3, %c0_4] : memref<2x2048xf32, #tpu.memory_space<vmem>>, vector<2x2048xf32>
    tpu.vector_store %arg4[%c0_3, %c0_4], %3 {strides = array<i32>} : memref<2x2048xf32, #tpu.memory_space<vmem>>, vector<2x2048xf32>,
    return
  }
  func.func @transform_0(%arg0: i32, %arg1: i32) -> (i32, i32) {
    %c0_i32 = arith.constant 0 : i32
    return %arg0, %arg1 : i32, i32
  }
  func.func @transform_1(%arg0: i32, %arg1: i32) -> (i32, i32) {
    %c0_i32 = arith.constant 0 : i32
    %c0_i32_0 = arith.constant 0 : i32
    return %c0_i32, %arg1 : i32, i32
  }
  func.func @transform_2(%arg0: i32, %arg1: i32) -> (i32, i32) {
    %c0_i32 = arith.constant 0 : i32
    return %arg0, %arg1 : i32, i32
  }
}

</mosaic_0001>

<bundles_post_ra>
// kernel: tpu_custom_call.1
= control target key start
LH: loop header
LB: loop body
LE: loop exit
PB: predicated region body
PF: predicated region fallthrough
CT: control target
= control target key end

     0   :  { %7 = vsyncpa [#allocation3], 0  ;;  %s302_s0 = inlined_call_operand.hbm [shape: f32[2,2048], index: 0, kind: input, shape index: {}]   ;;  %s303_s1 = inlined_call_operand.hbm [shape: f32[1,2048], index: 1, kind: input, shape index: {}]   ;;  %s304_s2 = inlined_call_operand.hbm [shape: f32[2,2048], index: 2, kind: output, shape index: {}]  }
   0x1   :  { %8 = vsyncpa [#allocation6], 0 }
   0x2   :  { %9 = vsyncpa [#allocation4], 0  ;;  %s274_s9 = smov [#allocation2]   ;;  %s275_s11 = smov [#allocation5]  }
   0x3   :  { %s16_s10 = sshll.u32 %s274_s9, 4  ;;  %s26_s12 = sshll.u32 %s275_s11, 4  ;;  %s17_s10 = int_to_ptr.vmem [resolvable:$true] %s16_s10  ;;  %s27_s12 = int_to_ptr.vmem [resolvable:$true] %s26_s12 }
   0x4   :  { %s216_s13 = scalar_lea.vmem %s17_s10, 512  ;;  %p221_p1 = scmp.lt.s32.totalorder %s17_s10, %s17_s10 }
   0x5   :  { %p217_p0 = scmp.ne.s32.totalorder %s17_s10, %s216_s13  ;;  %p222_p2 = scmp.lt.s32.totalorder %s216_s13, %s216_s13 }
   0x7   :  { %p223_p3 = por %p222_p2, %p221_p1 }
   0x9   :  { %p224_p4 = pnand %p223_p3, %p217_p0 }
   0xb   :  { %227 = shalt.err (!%p224_p4)
}
   0xc   :  { %19 = dma.hbm_to_vmem [thread:$0]  %s302_s0, 512, %s17_s10, [#allocation3]  }
   0xd   :  { %s236_s16 = scalar_lea.vmem %s27_s12, 256  ;;  %p241_p6 = scmp.lt.s32.totalorder %s27_s12, %s27_s12 }
   0xe   :  { %p237_p5 = scmp.ne.s32.totalorder %s27_s12, %s236_s16  ;;  %p242_p7 = scmp.lt.s32.totalorder %s236_s16, %s236_s16 }
  0x10   :  { %p243_p8 = por %p242_p7, %p241_p6 }
  0x12   :  { %p244_p9 = pnand %p243_p8, %p237_p5 }
  0x14   :  { %247 = shalt.err (!%p244_p9)
}
  0x15   :  { %29 = dma.hbm_to_vmem [thread:$0]  %s303_s1, 256, %s27_s12, [#allocation6]  }
  0x16   :  { %268 = dma.done.wait [#allocation3], 512  }
  0x17   :  { %269 = vsyncadd [#allocation3], 4294966784 }
  0x18   :  { %270 = dma.done.wait [#allocation6], 256  }
  0x19   :  { %271 = vsyncadd [#allocation6], 4294967040  ;;  %v44_v0 = vlaneseq  ;;  %v276_v1 = vmov 1983009808   ;;  %v40_v13 = vld [vmem:[#allocation5] sm:$0xff]  ;;  %v41_v19 = vld [vmem:[#allocation5 + $0x8] sm:$0xff] }
  0x1a   :  { %v111_v2 = vunpack.c.l.s4 %v276_v1  ;;  %v36_v36 = vld [vmem:[#allocation2] sm:$0xff]  ;;  %v37_v42 = vld [vmem:[#allocation2 + $0x8] sm:$0xff]  ;;  %v38_v50 = vld [vmem:[#allocation2 + $0x10] sm:$0xff]  ;;  %s277_s0 = smov [#allocation7]  }
  0x1b   :  { %v45_v3 = vshrl.u32 %v44_v0, 7  ;;  %v39_v57 = vld [vmem:[#allocation2 + $0x18] sm:$0xff]  ;;  %s194_s1 = sshll.u32 %s277_s0, 4  ;;  %s195_s1 = int_to_ptr.vmem [resolvable:$true] %s194_s1 }
  0x1c   :  { %v112_v4 = vunpack.c.0.s8 %v111_v2  ;;  %s248_s19 = scalar_lea.vmem %s195_s1, 512  ;;  %p253_p11 = scmp.lt.s32.totalorder %s195_s1, %s195_s1 }
  0x1d   :  { %v46_v5 = vsub.s32 0, %v45_v3  ;;  %v50_v6 = vsub.s32 1, %v45_v3  ;;  %v54_v7 = vsub.s32 2, %v45_v3  ;;  %v58_v8 = vsub.s32 3, %v45_v3  ;;  %p249_p10 = scmp.ne.s32.totalorder %s195_s1, %s248_s19  ;;  %p254_p12 = scmp.lt.s32.totalorder %s248_s19, %s248_s19 }
  0x1e   :  { %v62_v9 = vsub.s32 4, %v45_v3  ;;  %v66_v10 = vsub.s32 5, %v45_v3  ;;  %v70_v11 = vsub.s32 6, %v45_v3  ;;  %v74_v12 = vsub.s32 7, %v45_v3 }
  0x1f   :  { %v115_v14 = vsub.s32 %v112_v4, %v45_v3  ;;  %v47_v15 = vrot.slane %v40_v13, %v46_v5  ;;  %v51_v16 = vrot.slane %v40_v13, %v50_v6  ;;  %v55_v17 = vrot.slane %v40_v13, %v54_v7  ;;  %p255_p13 = por %p254_p12, %p253_p11 }
  0x20   :  { %v59_v18 = vrot.slane %v40_v13, %v58_v8  ;;  %v63_v20 = vrot.slane %v40_v13, %v62_v9  ;;  %v67_v21 = vrot.slane %v40_v13, %v66_v10  ;;  %v71_v22 = vrot.slane %v40_v13, %v70_v11 }
  0x21   :  { %v75_v23 = vrot.slane %v40_v13, %v74_v12  ;;  %v108_v24 = vcombine.low %v47_v15, %v51_v16  ;;  %v79_v26 = vrot.slane %v41_v19, %v46_v5  ;;  %v83_v27 = vrot.slane %v41_v19, %v50_v6  ;;  %p256_p0 = pnand %p255_p13, %p249_p10 }
  0x22   :  { %v109_v25 = vcombine.low %v55_v17, %v59_v18  ;;  %v125_v28 = vcombine.low %v63_v20, %v67_v21  ;;  %v87_v30 = vrot.slane %v41_v19, %v54_v7  ;;  %v91_v31 = vrot.slane %v41_v19, %v58_v8 }
  0x23   :  { %v126_v29 = vcombine.low %v71_v22, %v75_v23  ;;  %v116_v32 = vrot.slane %v108_v24, %v115_v14  ;;  %v142_v34 = vcombine.low %v79_v26, %v83_v27  ;;  %v95_v35 = vrot.slane %v41_v19, %v62_v9 }
  0x24   :  { %v123_v33 = vrot.slane %v109_v25, %v115_v14  ;;  %v133_v37 = vrot.slane %v125_v28, %v115_v14  ;;  %v143_v39 = vcombine.low %v87_v30, %v91_v31  ;;  %v99_v40 = vrot.slane %v41_v19, %v66_v10 }
  0x25   :  { %v140_v38 = vrot.slane %v126_v29, %v115_v14  ;;  %v150_v43 = vrot.slane %v142_v34, %v115_v14  ;;  %v103_v44 = vrot.slane %v41_v19, %v70_v11  ;;  %v107_v45 = vrot.slane %v41_v19, %v74_v12 }
  0x26   :  { %v124_v41 = vcombine.low %v116_v32, %v123_v33  ;;  %v157_v47 = vrot.slane %v143_v39, %v115_v14  ;;  %v159_v48 = vcombine.low %v95_v35, %v99_v40 }
  0x27   :  { %v141_v46 = vcombine.low %v133_v37, %v140_v38  ;;  %v160_v51 = vcombine.low %v103_v44, %v107_v45 }
  0x28   :  { %v180_v49 = vadd.f32 %v124_v41, %v36_v36  ;;  %v158_v53 = vcombine.low %v150_v43, %v157_v47  ;;  %v167_v54 = vrot.slane %v159_v48, %v115_v14 }
  0x29   :  { %v181_v52 = vadd.f32 %v141_v46, %v37_v42  ;;  %v174_v55 = vrot.slane %v160_v51, %v115_v14 }
  0x2a   :  { %184 = vst [vmem:[#allocation7] sm:$0xff] %v180_v49  ;;  %v182_v56 = vadd.f32 %v158_v53, %v38_v50 }
  0x2b   :  { %185 = vst [vmem:[#allocation7 + $0x8] sm:$0xff] %v181_v52  ;;  %v175_v58 = vcombine.low %v167_v54, %v174_v55 }
  0x2c   :  { %186 = vst [vmem:[#allocation7 + $0x10] sm:$0xff] %v182_v56 }
  0x2d   :  { %v183_v59 = vadd.f32 %v175_v58, %v39_v57 }
  0x2f   :  { %187 = vst [vmem:[#allocation7 + $0x18] sm:$0xff] %v183_v59 }
  0x30   :  { %259 = shalt.err (!%p256_p0)
}
  0x31   :  { %197 = dma.vmem_to_hbm [thread:$0]  %s195_s1, 512, %s304_s2, [#allocation4]  }
  0x32   :  { %272 = dma.done.wait [#allocation4], 512  }
  0x33   :  { %273 = vsyncadd [#allocation4], 4294966784 }
  0x34   :  { %201 = vsyncpa [#allocation3], 1 }
  0x35   :  { %202 = vsyncpa [#allocation6], 1 }
  0x36   :  { %203 = vsyncpa [#allocation4], 1 }

</bundles_post_ra>
